<compile_context>
chip_gen: v5e
topology: v5e:2x2
jax: 0.10.0
libtpu: 0.0.40
codegen_flags: <defaults>
</compile_context>

<pallas_src>
import numpy as np
import jax
import jax.numpy as jnp
from jax import lax
from jax.experimental import pallas as pl
from jax.experimental.pallas import tpu as pltpu

NEG_SLOPE = 0.01  # nn.LeakyReLU default negative_slope


def _bilinear_matrix(n_in, scale):
    """Interpolation matrix matching nn.Upsample(mode='bilinear', align_corners=False)."""
    n_out = n_in * scale
    m = np.zeros((n_out, n_in), dtype=np.float32)
    for j in range(n_out):
        src = (j + 0.5) / scale - 0.5
        if src < 0.0:
            src = 0.0
        i0 = int(np.floor(src))
        i1 = min(i0 + 1, n_in - 1)
        frac = src - i0
        m[j, i0] += 1.0 - frac
        m[j, i1] += frac
    return m


def _row_shift(m, d):
    """out[p] = m[p + d]; rows referencing out-of-range indices are zero."""
    n = m.shape[0]
    out = np.zeros_like(m)
    if d > 0:
        out[: n - d] = m[d:]
    elif d < 0:
        out[-d:] = m[: n + d]
    else:
        out[:] = m
    return out


def _leaky(x):
    return jnp.where(x > 0, x, NEG_SLOPE * x)


def _pick_nb(N, H2, target_rows=256):
    """Images per grid block: aim for M=Nb*H2 ~ 256, keep >=2 grid blocks (v7x 2 TCs)."""
    nb = max(1, min(N, max(1, target_rows // H2)))
    if N >= 2:
        nb = min(nb, max(1, N // 2))
    while N % nb:
        nb -= 1
    return nb


def _make_kernel(H2, M, L1, L2):
    def kernel(x_ref, mh_ref, bd1_ref, b1_ref, bd2_ref, b2_ref, o_ref, cat1, cat2):
        # ---- bilinear H-upsample of all Nb images at once (block-diagonal operator) ----
        t0 = jnp.dot(mh_ref[...], x_ref[...],
                     preferred_element_type=jnp.float32)                # (M, L1)

        row = lax.broadcasted_iota(jnp.int32, (M, L1), 0)
        not_top = (row % H2) != 0          # row-1 stays inside the same image
        not_bot = (row % H2) != (H2 - 1)   # row+1 stays inside the same image

        # ---- conv1: 3 H-taps folded into K = [u[p-1] | u[p] | u[p+1]] ----
        # Row shifts via sublane roll (XLU) + boundary-row zeroing (VPU); no shift matmuls.
        cat1[:, 0:L1] = jnp.where(not_top, pltpu.roll(t0, shift=1, axis=0), 0.0)
        cat1[:, L1:2 * L1] = t0
        cat1[:, 2 * L1:3 * L1] = jnp.where(not_bot, pltpu.roll(t0, shift=M - 1, axis=0), 0.0)

        h1 = jnp.dot(cat1[...], bd1_ref[...],
                     preferred_element_type=jnp.float32)                # (M, L2)
        h1 = _leaky(h1 + b1_ref[...])

        # ---- conv2: same trick on h1 ----
        row2 = lax.broadcasted_iota(jnp.int32, (M, L2), 0)
        not_top2 = (row2 % H2) != 0
        not_bot2 = (row2 % H2) != (H2 - 1)

        cat2[:, 0:L2] = jnp.where(not_top2, pltpu.roll(h1, shift=1, axis=0), 0.0)
        cat2[:, L2:2 * L2] = h1
        cat2[:, 2 * L2:3 * L2] = jnp.where(not_bot2, pltpu.roll(h1, shift=M - 1, axis=0), 0.0)

        out = jnp.dot(cat2[...], bd2_ref[...],
                      preferred_element_type=jnp.float32)               # (M, W2*Co)
        o_ref[...] = _leaky(out + b2_ref[...])                          # lane-dense store

    return kernel


def bilinear_up(x_nhwc, w1, b1, w2, b2, scale=2):
    """x_nhwc: (N,H,W,Ci). w1: (9,Ci,Cm) taps (ky*3+kx). w2: (9,Cm,Co). b*: (1,C)."""
    N, H, W, Ci = x_nhwc.shape
    Cm = w1.shape[2]
    Co = w2.shape[2]
    H2, W2 = H * scale, W * scale

    Nb = _pick_nb(N, H2)
    M = Nb * H2
    L1 = W * Ci
    L2 = W2 * Cm
    Lo = W2 * Co

    # ---- host/trace-time operator construction (small, O(H^2)/O(W^2 * C)) ----
    mh = _bilinear_matrix(H, scale)                                     # (H2, H)
    mw = _bilinear_matrix(W, scale)                                     # (W2, W)
    mh_big = np.kron(np.eye(Nb, dtype=np.float32), mh)                  # (M, Nb*H)

    # W-upsample rows shifted by kx-1 (zero rows encode conv1's W zero-padding).
    mw_sh = np.stack([_row_shift(mw, kx - 1) for kx in range(3)])       # (3, W2, W)
    # Selection matrices E[kx][w_in, q] = 1 iff w_in == q + kx - 1 (conv2 W taps).
    E = np.stack([_row_shift(np.eye(W2, dtype=np.float32), kx - 1).T
                  for kx in range(3)])                                  # (3, W2, W2)

    w1_r = w1.reshape(3, 3, Ci, Cm)
    w2_r = w2.reshape(3, 3, Cm, Co)
    # bd1[(ky,w,ci),(q,cm)] = sum_kx mw_pad[q+kx-1, w] * w1[ky,kx,ci,cm]
    bd1 = jnp.einsum('xqw,yxic->ywiqc', jnp.asarray(mw_sh), w1_r).reshape(3 * L1, L2)
    # bd2[(ky,w,cm),(q,co)] = w2[ky, w-q+1, cm, co] (banded block matrix)
    bd2 = jnp.einsum('xwq,yxmo->ywmqo', jnp.asarray(E), w2_r).reshape(3 * L2, Lo)
    b1_t = jnp.tile(jnp.reshape(b1, (1, Cm)), (1, W2))                  # (1, L2)
    b2_t = jnp.tile(jnp.reshape(b2, (1, Co)), (1, W2))                  # (1, Lo)

    # Lane-dense activation layout (channels minor): (N*H, W*Ci). Pure reshape.
    x2d = x_nhwc.reshape(N * H, L1)

    kernel = _make_kernel(H2, M, L1, L2)
    out2d = pl.pallas_call(
        kernel,
        out_shape=jax.ShapeDtypeStruct((N * H2, Lo), jnp.float32),
        grid_spec=pltpu.PrefetchScalarGridSpec(
            num_scalar_prefetch=0,
            grid=(N // Nb,),
            in_specs=[
                pl.BlockSpec((Nb * H, L1), lambda n: (n, 0)),
                pl.BlockSpec((M, Nb * H), lambda n: (0, 0)),
                pl.BlockSpec((3 * L1, L2), lambda n: (0, 0)),
                pl.BlockSpec((1, L2), lambda n: (0, 0)),
                pl.BlockSpec((3 * L2, Lo), lambda n: (0, 0)),
                pl.BlockSpec((1, Lo), lambda n: (0, 0)),
            ],
            out_specs=pl.BlockSpec((M, Lo), lambda n: (n, 0)),
            scratch_shapes=[
                pltpu.VMEM((M, 3 * L1), jnp.float32),   # conv1 K-folded activations
                pltpu.VMEM((M, 3 * L2), jnp.float32),   # conv2 K-folded activations
            ],
        ),
        compiler_params=pltpu.CompilerParams(
            dimension_semantics=("parallel",)),          # batch groups independent
    )(x2d, jnp.asarray(mh_big), bd1, b1_t, bd2, b2_t)

    return out2d.reshape(N, H2, W2, Co)


def reference(x_nhwc, w1, b1, w2, b2, scale=2):
    """Pure-JAX reference (upsample via interpolation matrices, conv via lax.conv)."""
    N, H, W, Ci = x_nhwc.shape
    mh = jnp.asarray(_bilinear_matrix(H, scale))
    mw = jnp.asarray(_bilinear_matrix(W, scale))
    u = jnp.einsum('ph,nhwc->npwc', mh, x_nhwc)
    u = jnp.einsum('qw,npwc->npqc', mw, u)

    def conv(y, w_taps, b):
        w_hwio = w_taps.reshape(3, 3, w_taps.shape[1], w_taps.shape[2])
        out = lax.conv_general_dilated(
            y, w_hwio, window_strides=(1, 1), padding='SAME',
            dimension_numbers=('NHWC', 'HWIO', 'NHWC'))
        return out + b.reshape(1, 1, 1, -1)

    h = conv(u, w1, b1)
    h = jnp.where(h > 0, h, NEG_SLOPE * h)
    o = conv(h, w2, b2)
    o = jnp.where(o > 0, o, NEG_SLOPE * o)
    return o


if __name__ == "__main__":
    key = jax.random.PRNGKey(0)
    k1, k2, k3, k4, k5 = jax.random.split(key, 5)

    N, Ci, H, W = 2, 4, 16, 16           # in_channels=4
    Cm, Co = Ci // 2, Ci                 # finalconv2 -> Ci//2, finalconv3 -> out_channels=4
    scale = 2

    x_nchw = jax.random.normal(k1, (N, Ci, H, W), dtype=jnp.float32)

    # Deterministic synthetic weights (shapes match nn.Conv2d(Ci, Ci//2, 3) / (Ci//2, Co, 3)).
    # Stored in "tap" format: (kh*kw, in_ch, out_ch); equivalent to PyTorch OIHW reordered.
    fan1 = Ci * 9
    w1 = jax.random.uniform(k2, (9, Ci, Cm), jnp.float32,
                            -1.0 / np.sqrt(fan1), 1.0 / np.sqrt(fan1))
    b1 = jax.random.uniform(k3, (1, Cm), jnp.float32,
                            -1.0 / np.sqrt(fan1), 1.0 / np.sqrt(fan1))
    fan2 = Cm * 9
    w2 = jax.random.uniform(k4, (9, Cm, Co), jnp.float32,
                            -1.0 / np.sqrt(fan2), 1.0 / np.sqrt(fan2))
    b2 = jax.random.uniform(k5, (1, Co), jnp.float32,
                            -1.0 / np.sqrt(fan2), 1.0 / np.sqrt(fan2))

    # NCHW (PyTorch) -> NHWC (kernel layout)
    x_nhwc = jnp.transpose(x_nchw, (0, 2, 3, 1))

    out = bilinear_up(x_nhwc, w1, b1, w2, b2, scale=scale)
    out = jax.block_until_ready(out)

    ref = reference(x_nhwc, w1, b1, w2, b2, scale=scale)
    np.testing.assert_allclose(np.asarray(out), np.asarray(ref),
                               rtol=1e-4, atol=1e-4)

    # Back to NCHW to match the PyTorch module's output convention.
    out_nchw = jnp.transpose(out, (0, 3, 1, 2))
    assert out_nchw.shape == (N, Co, scale * H, scale * W)
    print("KERNEL_OK")
</pallas_src>

<mosaic_0001>
module attributes {stable_mosaic.version = 11 : i64} {
  func.func @kernel(%arg0: i32, %arg1: memref<16x64xf32, #tpu.memory_space<vmem>>, %arg2: memref<32x16xf32, #tpu.memory_space<vmem>>, %arg3: memref<192x64xf32, #tpu.memory_space<vmem>>, %arg4: memref<1x64xf32, #tpu.memory_space<vmem>>, %arg5: memref<192x128xf32, #tpu.memory_space<vmem>>, %arg6: memref<1x128xf32, #tpu.memory_space<vmem>>, %arg7: memref<32x128xf32, #tpu.memory_space<vmem>>, %arg8: memref<32x192xf32, #tpu.memory_space<vmem>>, %arg9: memref<32x192xf32, #tpu.memory_space<vmem>>) attributes {dimension_semantics = [#tpu.dimension_semantics<parallel>], iteration_bounds = array<i64: 2>, scalar_prefetch = 0 : i64, scratch_operands = 2 : i64, tpu.core_type = #tpu.core_type<tc>, window_params = [{transform_indices = @transform_0, window_bounds = array<i64: 16, 64>}, {pipeline_mode = #tpu.pipeline_mode<synchronous>, transform_indices = @transform_1, window_bounds = array<i64: 32, 16>}, {pipeline_mode = #tpu.pipeline_mode<synchronous>, transform_indices = @transform_2, window_bounds = array<i64: 192, 64>}, {pipeline_mode = #tpu.pipeline_mode<synchronous>, transform_indices = @transform_3, window_bounds = array<i64: 1, 64>}, {pipeline_mode = #tpu.pipeline_mode<synchronous>, transform_indices = @transform_4, window_bounds = array<i64: 192, 128>}, {pipeline_mode = #tpu.pipeline_mode<synchronous>, transform_indices = @transform_5, window_bounds = array<i64: 1, 128>}, {transform_indices = @transform_6, window_bounds = array<i64: 32, 128>}]} {
    %c0 = arith.constant 0 : index
    %c0_0 = arith.constant 0 : index
    %0 = vector.load %arg2[%c0, %c0_0] : memref<32x16xf32, #tpu.memory_space<vmem>>, vector<32x16xf32>
    %c0_1 = arith.constant 0 : index
    %c0_2 = arith.constant 0 : index
    %1 = vector.load %arg1[%c0_1, %c0_2] : memref<16x64xf32, #tpu.memory_space<vmem>>, vector<16x64xf32>
    %cst = arith.constant dense<0.000000e+00> : vector<32x64xf32>
    %2 = tpu.matmul %0, %1, %cst {dimension_numbers = #tpu.dot_dimension_numbers<[1], [0], [0], [1], [0, 0, 1, 1], [], []>} : vector<32x16xf32>, vector<16x64xf32>, vector<32x64xf32> -> vector<32x64xf32>
    %3 = tpu.iota {dimensions = array<i32: 0>} : vector<32x64xi32>
    %c32_i32 = arith.constant 32 : i32
    %c0_i32 = arith.constant 0 : i32
    %4 = arith.cmpi eq, %c32_i32, %c0_i32 : i32
    %c1_i32 = arith.constant 1 : i32
    %5 = arith.select %4, %c1_i32, %c32_i32 : i32
    %6 = vector.broadcast %5 : i32 to vector<32x64xi32>
    %7 = arith.remsi %3, %6 : vector<32x64xi32>
    %c0_i32_3 = arith.constant 0 : i32
    %8 = vector.broadcast %c0_i32_3 : i32 to vector<32x64xi32>
    %9 = arith.cmpi ne, %7, %8 : vector<32x64xi32>
    %c0_i32_4 = arith.constant 0 : i32
    %10 = vector.broadcast %c0_i32_4 : i32 to vector<32x64xi32>
    %11 = arith.cmpi slt, %7, %10 : vector<32x64xi32>
    %c0_i32_5 = arith.constant 0 : i32
    %12 = arith.cmpi slt, %5, %c0_i32_5 : i32
    %13 = vector.broadcast %12 : i1 to vector<32x64xi1>
    %14 = vector.broadcast %13 : vector<32x64xi1> to vector<32x64xi1>
    %15 = arith.xori %11, %14 : vector<32x64xi1>
    %16 = arith.andi %15, %9 : vector<32x64xi1>
    %17 = vector.broadcast %5 : i32 to vector<32x64xi32>
    %18 = arith.addi %7, %17 : vector<32x64xi32>
    %19 = arith.select %16, %18, %7 : vector<32x64xi1>, vector<32x64xi32>
    %c0_i32_6 = arith.constant 0 : i32
    %20 = vector.broadcast %c0_i32_6 : i32 to vector<32x64xi32>
    %21 = arith.cmpi ne, %19, %20 : vector<32x64xi32>
    %c32_i32_7 = arith.constant 32 : i32
    %c0_i32_8 = arith.constant 0 : i32
    %22 = arith.cmpi eq, %c32_i32_7, %c0_i32_8 : i32
    %c1_i32_9 = arith.constant 1 : i32
    %23 = arith.select %22, %c1_i32_9, %c32_i32_7 : i32
    %24 = vector.broadcast %23 : i32 to vector<32x64xi32>
    %25 = arith.remsi %3, %24 : vector<32x64xi32>
    %c0_i32_10 = arith.constant 0 : i32
    %26 = vector.broadcast %c0_i32_10 : i32 to vector<32x64xi32>
    %27 = arith.cmpi ne, %25, %26 : vector<32x64xi32>
    %c0_i32_11 = arith.constant 0 : i32
    %28 = vector.broadcast %c0_i32_11 : i32 to vector<32x64xi32>
    %29 = arith.cmpi slt, %25, %28 : vector<32x64xi32>
    %c0_i32_12 = arith.constant 0 : i32
    %30 = arith.cmpi slt, %23, %c0_i32_12 : i32
    %31 = vector.broadcast %30 : i1 to vector<32x64xi1>
    %32 = vector.broadcast %31 : vector<32x64xi1> to vector<32x64xi1>
    %33 = arith.xori %29, %32 : vector<32x64xi1>
    %34 = arith.andi %33, %27 : vector<32x64xi1>
    %35 = vector.broadcast %23 : i32 to vector<32x64xi32>
    %36 = arith.addi %25, %35 : vector<32x64xi32>
    %37 = arith.select %34, %36, %25 : vector<32x64xi1>, vector<32x64xi32>
    %c31_i32 = arith.constant 31 : i32
    %38 = vector.broadcast %c31_i32 : i32 to vector<32x64xi32>
    %39 = arith.cmpi ne, %37, %38 : vector<32x64xi32>
    %c1_i32_13 = arith.constant 1 : i32
    %40 = tpu.dynamic_rotate %2 by %c1_i32_13 dim 0 : vector<32x64xf32>, i32 -> vector<32x64xf32>
    %cst_14 = arith.constant 0.000000e+00 : f32
    %41 = vector.broadcast %cst_14 : f32 to vector<32x64xf32>
    %42 = arith.select %21, %40, %41 : vector<32x64xi1>, vector<32x64xf32>
    %c0_15 = arith.constant 0 : index
    %c0_16 = arith.constant 0 : index
    %43 = vector.load %arg8[%c0_15, %c0_16] : memref<32x192xf32, #tpu.memory_space<vmem>>, vector<32x64xf32>
    tpu.vector_store %arg8[%c0_15, %c0_16], %42 {strides = array<i32>} : memref<32x192xf32, #tpu.memory_space<vmem>>, vector<32x64xf32>,
    %c0_17 = arith.constant 0 : index
    %c64 = arith.constant 64 : index
    %44 = vector.load %arg8[%c0_17, %c64] : memref<32x192xf32, #tpu.memory_space<vmem>>, vector<32x64xf32>
    tpu.vector_store %arg8[%c0_17, %c64], %2 {strides = array<i32>} : memref<32x192xf32, #tpu.memory_space<vmem>>, vector<32x64xf32>,
    %c31_i32_18 = arith.constant 31 : i32
    %45 = tpu.dynamic_rotate %2 by %c31_i32_18 dim 0 : vector<32x64xf32>, i32 -> vector<32x64xf32>
    %cst_19 = arith.constant 0.000000e+00 : f32
    %46 = vector.broadcast %cst_19 : f32 to vector<32x64xf32>
    %47 = arith.select %39, %45, %46 : vector<32x64xi1>, vector<32x64xf32>
    %c0_20 = arith.constant 0 : index
    %c128 = arith.constant 128 : index
    %48 = vector.load %arg8[%c0_20, %c128] : memref<32x192xf32, #tpu.memory_space<vmem>>, vector<32x64xf32>
    tpu.vector_store %arg8[%c0_20, %c128], %47 {strides = array<i32>} : memref<32x192xf32, #tpu.memory_space<vmem>>, vector<32x64xf32>,
    %c0_21 = arith.constant 0 : index
    %c0_22 = arith.constant 0 : index
    %49 = vector.load %arg8[%c0_21, %c0_22] : memref<32x192xf32, #tpu.memory_space<vmem>>, vector<32x192xf32>
    %c0_23 = arith.constant 0 : index
    %c0_24 = arith.constant 0 : index
    %50 = vector.load %arg3[%c0_23, %c0_24] : memref<192x64xf32, #tpu.memory_space<vmem>>, vector<192x64xf32>
    %cst_25 = arith.constant dense<0.000000e+00> : vector<32x64xf32>
    %51 = tpu.matmul %49, %50, %cst_25 {dimension_numbers = #tpu.dot_dimension_numbers<[1], [0], [0], [1], [0, 0, 1, 1], [], []>} : vector<32x192xf32>, vector<192x64xf32>, vector<32x64xf32> -> vector<32x64xf32>
    %c0_26 = arith.constant 0 : index
    %c0_27 = arith.constant 0 : index
    %52 = vector.load %arg4[%c0_26, %c0_27] : memref<1x64xf32, #tpu.memory_space<vmem>>, vector<1x64xf32>
    %53 = vector.broadcast %52 : vector<1x64xf32> to vector<32x64xf32>
    %54 = arith.addf %51, %53 : vector<32x64xf32>
    %cst_28 = arith.constant 0.000000e+00 : f32
    %55 = vector.broadcast %cst_28 : f32 to vector<32x64xf32>
    %56 = arith.cmpf ogt, %54, %55 : vector<32x64xf32>
    %cst_29 = arith.constant 0.00999999977 : f32
    %57 = vector.broadcast %cst_29 : f32 to vector<32x64xf32>
    %58 = arith.mulf %57, %54 : vector<32x64xf32>
    %59 = arith.select %56, %54, %58 : vector<32x64xi1>, vector<32x64xf32>
    %60 = tpu.iota {dimensions = array<i32: 0>} : vector<32x64xi32>
    %c32_i32_30 = arith.constant 32 : i32
    %c0_i32_31 = arith.constant 0 : i32
    %61 = arith.cmpi eq, %c32_i32_30, %c0_i32_31 : i32
    %c1_i32_32 = arith.constant 1 : i32
    %62 = arith.select %61, %c1_i32_32, %c32_i32_30 : i32
    %63 = vector.broadcast %62 : i32 to vector<32x64xi32>
    %64 = arith.remsi %60, %63 : vector<32x64xi32>
    %c0_i32_33 = arith.constant 0 : i32
    %65 = vector.broadcast %c0_i32_33 : i32 to vector<32x64xi32>
    %66 = arith.cmpi ne, %64, %65 : vector<32x64xi32>
    %c0_i32_34 = arith.constant 0 : i32
    %67 = vector.broadcast %c0_i32_34 : i32 to vector<32x64xi32>
    %68 = arith.cmpi slt, %64, %67 : vector<32x64xi32>
    %c0_i32_35 = arith.constant 0 : i32
    %69 = arith.cmpi slt, %62, %c0_i32_35 : i32
    %70 = vector.broadcast %69 : i1 to vector<32x64xi1>
    %71 = vector.broadcast %70 : vector<32x64xi1> to vector<32x64xi1>
    %72 = arith.xori %68, %71 : vector<32x64xi1>
    %73 = arith.andi %72, %66 : vector<32x64xi1>
    %74 = vector.broadcast %62 : i32 to vector<32x64xi32>
    %75 = arith.addi %64, %74 : vector<32x64xi32>
    %76 = arith.select %73, %75, %64 : vector<32x64xi1>, vector<32x64xi32>
    %c0_i32_36 = arith.constant 0 : i32
    %77 = vector.broadcast %c0_i32_36 : i32 to vector<32x64xi32>
    %78 = arith.cmpi ne, %76, %77 : vector<32x64xi32>
    %c32_i32_37 = arith.constant 32 : i32
    %c0_i32_38 = arith.constant 0 : i32
    %79 = arith.cmpi eq, %c32_i32_37, %c0_i32_38 : i32
    %c1_i32_39 = arith.constant 1 : i32
    %80 = arith.select %79, %c1_i32_39, %c32_i32_37 : i32
    %81 = vector.broadcast %80 : i32 to vector<32x64xi32>
    %82 = arith.remsi %60, %81 : vector<32x64xi32>
    %c0_i32_40 = arith.constant 0 : i32
    %83 = vector.broadcast %c0_i32_40 : i32 to vector<32x64xi32>
    %84 = arith.cmpi ne, %82, %83 : vector<32x64xi32>
    %c0_i32_41 = arith.constant 0 : i32
    %85 = vector.broadcast %c0_i32_41 : i32 to vector<32x64xi32>
    %86 = arith.cmpi slt, %82, %85 : vector<32x64xi32>
    %c0_i32_42 = arith.constant 0 : i32
    %87 = arith.cmpi slt, %80, %c0_i32_42 : i32
    %88 = vector.broadcast %87 : i1 to vector<32x64xi1>
    %89 = vector.broadcast %88 : vector<32x64xi1> to vector<32x64xi1>
    %90 = arith.xori %86, %89 : vector<32x64xi1>
    %91 = arith.andi %90, %84 : vector<32x64xi1>
    %92 = vector.broadcast %80 : i32 to vector<32x64xi32>
    %93 = arith.addi %82, %92 : vector<32x64xi32>
    %94 = arith.select %91, %93, %82 : vector<32x64xi1>, vector<32x64xi32>
    %c31_i32_43 = arith.constant 31 : i32
    %95 = vector.broadcast %c31_i32_43 : i32 to vector<32x64xi32>
    %96 = arith.cmpi ne, %94, %95 : vector<32x64xi32>
    %c1_i32_44 = arith.constant 1 : i32
    %97 = tpu.dynamic_rotate %59 by %c1_i32_44 dim 0 : vector<32x64xf32>, i32 -> vector<32x64xf32>
    %cst_45 = arith.constant 0.000000e+00 : f32
    %98 = vector.broadcast %cst_45 : f32 to vector<32x64xf32>
    %99 = arith.select %78, %97, %98 : vector<32x64xi1>, vector<32x64xf32>
    %c0_46 = arith.constant 0 : index
    %c0_47 = arith.constant 0 : index
    %100 = vector.load %arg9[%c0_46, %c0_47] : memref<32x192xf32, #tpu.memory_space<vmem>>, vector<32x64xf32>
    tpu.vector_store %arg9[%c0_46, %c0_47], %99 {strides = array<i32>} : memref<32x192xf32, #tpu.memory_space<vmem>>, vector<32x64xf32>,
    %c0_48 = arith.constant 0 : index
    %c64_49 = arith.constant 64 : index
    %101 = vector.load %arg9[%c0_48, %c64_49] : memref<32x192xf32, #tpu.memory_space<vmem>>, vector<32x64xf32>
    tpu.vector_store %arg9[%c0_48, %c64_49], %59 {strides = array<i32>} : memref<32x192xf32, #tpu.memory_space<vmem>>, vector<32x64xf32>,
    %c31_i32_50 = arith.constant 31 : i32
    %102 = tpu.dynamic_rotate %59 by %c31_i32_50 dim 0 : vector<32x64xf32>, i32 -> vector<32x64xf32>
    %cst_51 = arith.constant 0.000000e+00 : f32
    %103 = vector.broadcast %cst_51 : f32 to vector<32x64xf32>
    %104 = arith.select %96, %102, %103 : vector<32x64xi1>, vector<32x64xf32>
    %c0_52 = arith.constant 0 : index
    %c128_53 = arith.constant 128 : index
    %105 = vector.load %arg9[%c0_52, %c128_53] : memref<32x192xf32, #tpu.memory_space<vmem>>, vector<32x64xf32>
    tpu.vector_store %arg9[%c0_52, %c128_53], %104 {strides = array<i32>} : memref<32x192xf32, #tpu.memory_space<vmem>>, vector<32x64xf32>,
    %c0_54 = arith.constant 0 : index
    %c0_55 = arith.constant 0 : index
    %106 = vector.load %arg9[%c0_54, %c0_55] : memref<32x192xf32, #tpu.memory_space<vmem>>, vector<32x192xf32>
    %c0_56 = arith.constant 0 : index
    %c0_57 = arith.constant 0 : index
    %107 = vector.load %arg5[%c0_56, %c0_57] : memref<192x128xf32, #tpu.memory_space<vmem>>, vector<192x128xf32>
    %cst_58 = arith.constant dense<0.000000e+00> : vector<32x128xf32>
    %108 = tpu.matmul %106, %107, %cst_58 {dimension_numbers = #tpu.dot_dimension_numbers<[1], [0], [0], [1], [0, 0, 1, 1], [], []>} : vector<32x192xf32>, vector<192x128xf32>, vector<32x128xf32> -> vector<32x128xf32>
    %c0_59 = arith.constant 0 : index
    %c0_60 = arith.constant 0 : index
    %109 = vector.load %arg6[%c0_59, %c0_60] : memref<1x128xf32, #tpu.memory_space<vmem>>, vector<1x128xf32>
    %110 = vector.broadcast %109 : vector<1x128xf32> to vector<32x128xf32>
    %111 = arith.addf %108, %110 : vector<32x128xf32>
    %cst_61 = arith.constant 0.000000e+00 : f32
    %112 = vector.broadcast %cst_61 : f32 to vector<32x128xf32>
    %113 = arith.cmpf ogt, %111, %112 : vector<32x128xf32>
    %cst_62 = arith.constant 0.00999999977 : f32
    %114 = vector.broadcast %cst_62 : f32 to vector<32x128xf32>
    %115 = arith.mulf %114, %111 : vector<32x128xf32>
    %116 = arith.select %113, %111, %115 : vector<32x128xi1>, vector<32x128xf32>
    %c0_63 = arith.constant 0 : index
    %c0_64 = arith.constant 0 : index
    %117 = vector.load %arg7[%c0_63, %c0_64] : memref<32x128xf32, #tpu.memory_space<vmem>>, vector<32x128xf32>
    tpu.vector_store %arg7[%c0_63, %c0_64], %116 {strides = array<i32>} : memref<32x128xf32, #tpu.memory_space<vmem>>, vector<32x128xf32>,
    return
  }
  func.func @transform_0(%arg0: i32) -> (i32, i32) {
    %c0_i32 = arith.constant 0 : i32
    %c0_i32_0 = arith.constant 0 : i32
    return %arg0, %c0_i32 : i32, i32
  }
  func.func @transform_1(%arg0: i32) -> (i32, i32) {
    %c0_i32 = arith.constant 0 : i32
    %c0_i32_0 = arith.constant 0 : i32
    %c0_i32_1 = arith.constant 0 : i32
    return %c0_i32, %c0_i32_0 : i32, i32
  }
  func.func @transform_2(%arg0: i32) -> (i32, i32) {
    %c0_i32 = arith.constant 0 : i32
    %c0_i32_0 = arith.constant 0 : i32
    %c0_i32_1 = arith.constant 0 : i32
    return %c0_i32, %c0_i32_0 : i32, i32
  }
  func.func @transform_3(%arg0: i32) -> (i32, i32) {
    %c0_i32 = arith.constant 0 : i32
    %c0_i32_0 = arith.constant 0 : i32
    %c0_i32_1 = arith.constant 0 : i32
    return %c0_i32, %c0_i32_0 : i32, i32
  }
  func.func @transform_4(%arg0: i32) -> (i32, i32) {
    %c0_i32 = arith.constant 0 : i32
    %c0_i32_0 = arith.constant 0 : i32
    %c0_i32_1 = arith.constant 0 : i32
    return %c0_i32, %c0_i32_0 : i32, i32
  }
  func.func @transform_5(%arg0: i32) -> (i32, i32) {
    %c0_i32 = arith.constant 0 : i32
    %c0_i32_0 = arith.constant 0 : i32
    %c0_i32_1 = arith.constant 0 : i32
    return %c0_i32, %c0_i32_0 : i32, i32
  }
  func.func @transform_6(%arg0: i32) -> (i32, i32) {
    %c0_i32 = arith.constant 0 : i32
    %c0_i32_0 = arith.constant 0 : i32
    return %arg0, %c0_i32 : i32, i32
  }
}

</mosaic_0001>

<bundles_post_ra>
// kernel: tpu_custom_call.1
= control target key start
LH: loop header
LB: loop body
LE: loop exit
PB: predicated region body
PF: predicated region fallthrough
CT: control target
= control target key end

     0   :  { %11 = vsyncpa [#allocation5], 0  ;;  %s1317_s0 = inlined_call_operand.vmem [shape: f32[32,64], index: 0, kind: input, shape index: {}]   ;;  %s1318_s1 = inlined_call_operand.vmem [shape: f32[32,16], index: 1, kind: input, shape index: {}]   ;;  %s1319_s2 = inlined_call_operand.vmem [shape: f32[192,64], index: 2, kind: input, shape index: {}]   ;;  %s1320_s3 = inlined_call_operand.vmem [shape: f32[1,64], index: 3, kind: input, shape index: {}]   ;;  %s1321_s4 = inlined_call_operand.vmem [shape: f32[192,128], index: 4, kind: input, shape index: {}]   ;;  %s1322_s5 = inlined_call_operand.vmem [shape: f32[1,128], index: 5, kind: input, shape index: {}]   ;;  %s1323_s6 = inlined_call_operand.hbm [shape: f32[64,128], index: 6, kind: output, shape index: {}]  }
   0x1   :  { %13 = vsyncpa [#allocation5 + $0x1], 0  ;;  %s961_s21 = smov 0   ;;  %s963_s22 = smov 0  }
   0x2   :  { %s965_s23 = smov 0   ;;  %s967_s24 = smov 0  }
   0x3 LB: > { %s982_s25 = sadd.s32 4294967295, %s921_s24   ;;  %s788_s26 = sadd.s32 4294967294, %s921_s24   ;;  %s921_s24 = sphi %s967_s24, %s1333_s24   ;;  %s917_s23 = sphi %s965_s23, %s1332_s23   ;;  %s913_s22 = sphi %s963_s22, %s1331_s22   ;;  %s909_s21 = sphi %s961_s21, %s1330_s21  }
   0x4   : > { %s986_s27 = sadd.s32 1, %s921_s24   ;;  %s157_s28 = sadd.s32 1, %s917_s23 }
   0x5   : > { %s154_s29 = ssub.s32 %s921_s24, %s986_s27  ;;  %p167_p0 = scmp.ne.s32.totalorder %s917_s23, %s913_s22 }
   0x6   : > { %p155_p1 = scmp.eq.s32.totalorder %s154_s29, 0  ;;  %p168_p2 = scmp.eq.s32.totalorder %s982_s25, 1 }
   0x7   : > { %p173_p3 = scmp.ne.s32.totalorder %s913_s22, %s909_s21  ;;  %p174_p4 = scmp.eq.s32.totalorder %s788_s26, 1 }
   0x8   : > { %s997_s30 = scalar_select %p155_p1, %s917_s23, %s157_s28  }
   0x9   : > { %p999_p5 = por %p168_p2, %p167_p0  ;;  %p1003_p6 = por %p174_p4, %p173_p3 }
   0xa   : > { %p791_p7 = scmp.ge.s32.totalorder %s921_s24, 1  ;;  %p216_p8 = scmp.lt.s32.totalorder %s921_s24, 3 }
   0xc   : > { %p217_p9 = pnand %p791_p7, %p216_p8 }
   0xd   : > { %s793_s9 = sshll.u32 (!%p217_p9), %s982_s25, 1  ;;  %s923_s29 = smov (!%p217_p9), 64  }
   0xe   : > { %220 = sbr.rel (%p217_p9) target bundleno = 698 (0x2ba), region = 44  ;;  %p247_p10 = scmp.lt.s32.totalorder (!%p217_p9), %s793_s9, 3 }
   0xf   : > { %s243_s26 = sand.u32 (!%p217_p9), 1, %s913_s22   ;;  %s879_s20 = scalar_lea.hbm (!%p217_p9), %s1323_s6, 64 }
  0x10   : > { %s792_s28 = sshll.u32 (!%p217_p9), %s243_s26, 5 }
  0x13   : > { %s1335_s9 = smov (!%p247_p10, %s793_s9), 3  ;;  %v253_v2 = vld [vmem:[%s1318_s1] sm:$0xff]  ;;  %vm259_vm0 = vcmask 130048   ;;  %v255_v3 = vld [vmem:[%s1318_s1 + $0x10] sm:$0xff]  ;;  %v254_v4 = vld [vmem:[%s1318_s1 + $0x8] sm:$0xff]  ;;  %v301_v15 = vlaneseq  ;;  %vm375_vm1 = vcmask 523264  }
  0x14   : > { %s794_s10 = sshll.u32 %s1335_s9, 3  ;;  %v256_v5 = vld [vmem:[%s1318_s1 + $0x18] sm:$0xff]  ;;  %v448_v7 = vld [vmem:[%s1319_s2 + $0xb0] sm:$0xff]  ;;  %v447_v8 = vld [vmem:[%s1319_s2 + $0xa8] sm:$0xff]  ;;  %vm396_vm6 = vcmask 1048064   ;;  %s1277_s9 = scalar_lea.vmem [#allocation4], %s792_s28 }
  0x15   : > { %s250_s13 = scalar_lea.vmem %s1317_s0, %s794_s10  ;;  %v449_v6 = vld [vmem:[%s1319_s2 + $0xb8] sm:$0xff]  ;;  %v446_v9 = vld [vmem:[%s1319_s2 + $0xa0] sm:$0xff]  ;;  %v444_v11 = vld [vmem:[%s1319_s2 + $0x90] sm:$0xff]  ;;  %v1050_v16 = vshrl.u32 %v301_v15, 7  ;;  %s812_s10 = sshll.u32 %s982_s25, 5 }
  0x16   : > { %v258_v0 = vld [vmem:[%s250_s13 + $0x8] sm:$0xff]  ;;  %v257_v1 = vld [vmem:[%s250_s13] sm:$0xff]  ;;  %v445_v10 = vld [vmem:[%s1319_s2 + $0x98] sm:$0xff]  ;;  %s722_s13 = scalar_lea.hbm %s1323_s6, %s812_s10  ;;  %s723_s14 = sshll.u32 %s1277_s9, 4  ;;  %s724_s14 = int_to_ptr.vmem [resolvable:$true] %s723_s14 }
  0x17   : > { %286 = vmatpush.msra.mxu0 %v258_v0  ;;  %813 = vmatpush.msra.mxu2 %v258_v0  ;;  %v443_v12 = vld [vmem:[%s1319_s2 + $0x88] sm:$0xff]  ;;  %v442_v13 = vld [vmem:[%s1319_s2 + $0x80] sm:$0xff]  ;;  %v305_v18 = vadd.s32 24, %v1050_v16  ;;  %vm405_vm2 = vcmp.lt.s32.totalorder %v1050_v16, 7  ;;  %vm366_vm3 = vcmp.lt.s32.totalorder %v1050_v16, 1  ;;  %v310_v29 = vand.u32 31, %v1050_v16 }
  0x18   : > { %v441_v31 = vld [vmem:[%s1319_s2 + $0x78] sm:$0xff]  ;;  %v440_v32 = vld [vmem:[%s1319_s2 + $0x70] sm:$0xff]  ;;  %v439_v35 = vld [vmem:[%s1319_s2 + $0x68] sm:$0xff]  ;;  %s725_s15 = sshll.u32 %s722_s13, 4  ;;  %s711_s25 = scalar_lea.sflag [#allocation5], %s243_s26  ;;  %s726_s15 = int_to_ptr.hbm [resolvable:$true] %s725_s15 }
  0x19   : > { %287 = vmatpush.msra.mxu0 %v257_v1  ;;  %814 = vmatpush.msra.mxu2 %v257_v1  ;;  %v331_v26 = vand.u32 31, %v305_v18  ;;  %vm1083_vm5 = vcmp.ne.s32.totalorder %v310_v29, 0  ;;  %v438_v40 = vld [vmem:[%s1319_s2 + $0x60] sm:$0xff]  ;;  %v437_v45 = vld [vmem:[%s1319_s2 + $0x58] sm:$0xff]  ;;  %v436_v49 = vld [vmem:[%s1319_s2 + $0x50] sm:$0xff]  ;;  %s873_s16 = sshra.s32 %s726_s15, 4  ;;  %s874_s16 = int_to_ptr.hbm [resolvable:$true] %s873_s16 }
  0x1a   : > { %795 = vmatmul.msk.f32.vlgmr.msra.gmra.mxu0 %vm259_vm0, %v253_v2  ;;  %797 = vmatmul.msk.f32.vlgmr.msra.gmra.mxu2 %vm259_vm0, %v255_v3  ;;  %v435_v50 = vld [vmem:[%s1319_s2 + $0x48] sm:$0xff]  ;;  %v434_v51 = vld [vmem:[%s1319_s2 + $0x40] sm:$0xff]  ;;  %v433_v52 = vld [vmem:[%s1319_s2 + $0x38] sm:$0xff]  ;;  %s875_s17 = scalar_lea.hbm %s874_s16, 32  ;;  %p880_p0 = scmp.lt.s32.totalorder %s874_s16, %s1323_s6 }
  0x1b   : > { %503 = vmatpush.msrb.mxu2 %v449_v6  ;;  %466 = vmatpush.msra.mxu1 %v441_v31  ;;  %vm1078_vm4 = vcmp.ne.s32.totalorder %v331_v26, 31  ;;  %v432_v54 = vld [vmem:[%s1319_s2 + $0x30] sm:$0xff]  ;;  %v431_v55 = vld [vmem:[%s1319_s2 + $0x28] sm:$0xff]  ;;  %v430_v56 = vld [vmem:[%s1319_s2 + $0x20] sm:$0xff]  ;;  %p876_p11 = scmp.ne.s32.totalorder %s874_s16, %s875_s17  ;;  %p881_p1 = scmp.lt.s32.totalorder %s879_s20, %s875_s17 }
  0x1c   : > { %v429_v59 = vld [vmem:[%s1319_s2 + $0x18] sm:$0xff]  ;;  %v428_v60 = vld [vmem:[%s1319_s2 + $0x10] sm:$0xff]  ;;  %v427_v61 = vld [vmem:[%s1319_s2 + $0x8] sm:$0xff] }
  0x1d   : > { %504 = vmatpush.msrb.mxu2 %v448_v7  ;;  %467 = vmatpush.msra.mxu1 %v440_v32  ;;  %v426_v62 = vld [vmem:[%s1319_s2] sm:$0xff]  ;;  %v619_v7 = vld [vmem:[%s1321_s4 + $0xb8] sm:$0xff]  ;;  %v601_v36 = vld [vmem:[%s1321_s4 + $0x28] sm:$0xff]  ;;  %p877_p12 = pnand %p876_p11, %p999_p5  ;;  %p882_p2 = por %p881_p1, %p880_p0 }
  0x1e   : > { %673 = vmatpush.msrb.mxu0 %v619_v7  ;;  %v600_v39 = vld [vmem:[%s1321_s4 + $0x20] sm:$0xff] }
  0x1f   : > { %505 = vmatpush.msrb.mxu2 %v447_v8  ;;  %468 = vmatpush.msra.mxu1 %v439_v35  ;;  %v618_v8 = vld [vmem:[%s1321_s4 + $0xb0] sm:$0xff]  ;;  %p878_p13 = pneg %p877_p12 }
  0x20   : > { %674 = vmatpush.msrb.mxu0 %v618_v8 }
  0x21   : > { %506 = vmatpush.msrb.mxu2 %v446_v9  ;;  %469 = vmatpush.msra.mxu1 %v438_v40  ;;  %v617_v9 = vld [vmem:[%s1321_s4 + $0xa8] sm:$0xff]  ;;  %p883_p3 = pnand %p882_p2, %p878_p13 }
  0x22   : > { %796 = vmatmul.msk.f32.gmra.mxu0 %vm259_vm0, %v254_v4  ;;  %798 = vmatmul.msk.f32.gmra.mxu2 %vm259_vm0, %v256_v5 }
  0x23   : > { %507 = vmatpush.msrb.mxu2 %v445_v10  ;;  %470 = vmatpush.msra.mxu1 %v437_v45  ;;  %v616_v10 = vld [vmem:[%s1321_s4 + $0xa0] sm:$0xff] }
  0x24   : > { %675 = vmatpush.msrb.mxu0 %v617_v9 }
  0x25   : > { %508 = vmatpush.msrb.mxu2 %v444_v11  ;;  %471 = vmatpush.msra.mxu1 %v436_v49  ;;  %v615_v11 = vld [vmem:[%s1321_s4 + $0x98] sm:$0xff] }
  0x26   : > { %676 = vmatpush.msrb.mxu0 %v616_v10  ;;  %v599_v10 = vld [vmem:[%s1321_s4 + $0x18] sm:$0xff] }
  0x27   : > { %509 = vmatpush.msrb.mxu2 %v443_v12  ;;  %472 = vmatpush.msra.mxu1 %v435_v50  ;;  %v614_v12 = vld [vmem:[%s1321_s4 + $0x90] sm:$0xff] }
  0x28   : > { %677 = vmatpush.msrb.mxu0 %v615_v11  ;;  %v598_v11 = vld [vmem:[%s1321_s4 + $0x10] sm:$0xff] }
  0x29   : > { %510 = vmatpush.msrb.mxu2 %v442_v13  ;;  %473 = vmatpush.msra.mxu1 %v434_v51  ;;  %v613_v13 = vld [vmem:[%s1321_s4 + $0x88] sm:$0xff]  ;;  %v607_v51 = vld [vmem:[%s1321_s4 + $0x58] sm:$0xff] }
  0x2a   : > { %678 = vmatpush.msrb.mxu0 %v614_v12  ;;  %v597_v12 = vld [vmem:[%s1321_s4 + $0x8] sm:$0xff] }
  0x2b   : > { %474 = vmatpush.msra.mxu1 %v433_v52 }
  0x2c   : > { %679 = vmatpush.msrb.mxu0 %v613_v13  ;;  %v596_v13 = vld [vmem:[%s1321_s4] sm:$0xff] }
  0x2d   : > { %475 = vmatpush.msra.mxu1 %v432_v54 }
  0x2f   : > { %476 = vmatpush.msra.mxu1 %v431_v55 }
  0x31   : > { %477 = vmatpush.msra.mxu1 %v430_v56 }
  0x33   : > { %478 = vmatpush.msra.mxu1 %v429_v59  ;;  %v605_v59 = vld [vmem:[%s1321_s4 + $0x48] sm:$0xff] }
  0x35   : > { %479 = vmatpush.msra.mxu1 %v428_v60 }
  0x37   : > { %480 = vmatpush.msra.mxu1 %v427_v61  ;;  %v604_v61 = vld [vmem:[%s1321_s4 + $0x40] sm:$0xff] }
  0x39   : > { %481 = vmatpush.msra.mxu1 %v426_v62 }
  0x97   : > { %v289_v14 = vpop.f32.mrf.mxu0 }
  0x98   : > { %384 = vrot.lane.b32.xlu0 %v289_v14, %s923_s29  ;;  %v362_v22 = vrot.slane %v289_v14, 7  ;;  %v401_v23 = vrot.slane %v289_v14, 1  ;;  %v612_v14 = vld [vmem:[%s1321_s4 + $0x80] sm:$0xff] }
  0x99   : > { %680 = vmatpush.msrb.mxu0 %v612_v14 }
  0x9d   : > { %v295_v17 = vpop.f32.mrf.mxu2 }
  0x9e   : > { %v403_v19 = vrot.slane %v295_v17, 1  ;;  %388 = vrot.lane.b32.xlu1 %v295_v17, %s923_s29  ;;  %v364_v20 = vrot.slane %v295_v17, 7  ;;  %v857_v17 = vld [vmem:[%s1320_s3] ss:$0 sm:$0xff] }
  0x9f   : > { %v292_v21 = vpop.f32.mrf.mxu0 }
  0xa0   : > { %v363_v24 = vrot.slane %v292_v21, 7  ;;  %v402_v25 = vrot.slane %v292_v21, 1  ;;  %386 = vrot.lane.b32.xlu0 %v292_v21, %s923_s29 }
  0xa2   : > { %v407_v27 = vsel %vm405_vm2, %v402_v25, %v403_v19  ;;  %v408_v28 = vsel %vm405_vm2, %v401_v23, %v402_v25  ;;  %v369_v30 = vsel %vm366_vm3, %v362_v22, %v363_v24  ;;  %v368_v33 = vsel %vm366_vm3, %v363_v24, %v364_v20 }
  0xa3   : > { %414 = vst.msk [vmem:[#allocation2 + $0x8] sm:$0xff] %vm375_vm1, %v408_v28 }
  0xa4   : > { %415 = vst.msk [vmem:[#allocation2 + $0x18] sm:$0xff] %vm375_vm1, %v407_v27 }
  0xa5   : > { %v298_v34 = vpop.f32.mrf.mxu2  ;;  %377 = vst.msk [vmem:[#allocation2 + $0x10] sm:$0xff] %vm375_vm1, %v369_v30 }
  0xa6   : > { %v365_v37 = vrot.slane %v298_v34, 7  ;;  %v404_v38 = vrot.slane %v298_v34, 1  ;;  %390 = vrot.lane.b32.xlu1 %v298_v34, %s923_s29  ;;  %378 = vst.msk [vmem:[#allocation2 + $0x20] sm:$0xff] %vm375_vm1, %v368_v33 }
  0xa8   : > { %v406_v41 = vsel %vm405_vm2, %v403_v19, %v404_v38  ;;  %v409_v42 = vsel %vm405_vm2, %v404_v38, %v401_v23  ;;  %v370_v43 = vsel %vm366_vm3, %v365_v37, %v362_v22  ;;  %v367_v47 = vsel %vm366_vm3, %v364_v20, %v365_v37 }
  0xa9   : > { %v413_v44 = vsel %vm1078_vm4, %v409_v42, 0.0  ;;  %416 = vst.msk [vmem:[#allocation2 + $0x28] sm:$0xff] %vm375_vm1, %v406_v41  ;;  %v371_v46 = vsel %vm1083_vm5, %v370_v43, 0.0  ;;  %v611_v41 = vld [vmem:[%s1321_s4 + $0x78] sm:$0xff]  ;;  %v610_v42 = vld [vmem:[%s1321_s4 + $0x70] sm:$0xff] }
  0xaa   : > { %417 = vst.msk [vmem:[#allocation2 + $0x38] sm:$0xff] %vm375_vm1, %v413_v44  ;;  %v419_v48 = vld [vmem:[#allocation2 + $0x8] sm:$0xff]  ;;  %636 = vmatpush.msra.mxu3 %v611_v41 }
  0xab   : > { %799 = vmatmul.msk.f32.vlgmr.msrb.gmra.mxu2 %vm375_vm1, %v419_v48  ;;  %376 = vst.msk [vmem:[#allocation2] sm:$0xff] %vm375_vm1, %v371_v46  ;;  %v421_v53 = vld [vmem:[#allocation2 + $0x18] sm:$0xff]  ;;  %v609_v44 = vld [vmem:[%s1321_s4 + $0x68] sm:$0xff]  ;;  %v608_v46 = vld [vmem:[%s1321_s4 + $0x60] sm:$0xff] }
  0xac   : > { %379 = vst.msk [vmem:[#allocation2 + $0x30] sm:$0xff] %vm375_vm1, %v367_v47  ;;  %637 = vmatpush.msra.mxu3 %v610_v42 }
  0xae   : > { %638 = vmatpush.msra.mxu3 %v609_v44 }
  0xb0   : > { %v423_v57 = vld [vmem:[#allocation2 + $0x28] sm:$0xff]  ;;  %639 = vmatpush.msra.mxu3 %v608_v46 }
  0xb1   : > { %v425_v58 = vld [vmem:[#allocation2 + $0x38] sm:$0xff] }
  0xb2   : > { %640 = vmatpush.msra.mxu3 %v607_v51 }
  0xb3   : > { %800 = vmatmul.msk.f32.gmra.mxu2 %vm375_vm1, %v421_v53 }
  0xbb   : > { %801 = vmatmul.msk.f32.gmra.mxu2 %vm375_vm1, %v423_v57  ;;  %v606_v57 = vld [vmem:[%s1321_s4 + $0x50] sm:$0xff] }
  0xbc   : > { %641 = vmatpush.msra.mxu3 %v606_v57 }
  0xbe   : > { %642 = vmatpush.msra.mxu3 %v605_v59 }
  0xc0   : > { %643 = vmatpush.msra.mxu3 %v604_v61 }
  0xc3   : > { %802 = vmatmul.msk.f32.gmra.mxu2 %vm375_vm1, %v425_v58 }
 0x10a   : > { %v385_v63 = vpop.permute.xlu0 %384 }
 0x10b   : > { %397 = vst.msk [vmem:[#allocation2] sm:$0xff] %vm396_vm6, %v385_v63 }
 0x110   : > { %v389_v0 = vpop.permute.xlu1 %388 }
 0x111   : > { %399 = vst.msk [vmem:[#allocation2 + $0x20] sm:$0xff] %vm396_vm6, %v389_v0  ;;  %v603_v0 = vld [vmem:[%s1321_s4 + $0x38] sm:$0xff] }
 0x112   : > { %v387_v1 = vpop.permute.xlu0 %386  ;;  %v418_v2 = vld [vmem:[#allocation2] sm:$0xff]  ;;  %644 = vmatpush.msra.mxu3 %v603_v0 }
 0x113   : > { %398 = vst.msk [vmem:[#allocation2 + $0x10] sm:$0xff] %vm396_vm6, %v387_v1  ;;  %482 = vmatmul.f32.vlgmr.msra.gmra.mxu1 %v418_v2 }
 0x118   : > { %v391_v3 = vpop.permute.xlu1 %390  ;;  %v422_v5 = vld [vmem:[#allocation2 + $0x20] sm:$0xff] }
 0x119   : > { %400 = vst.msk [vmem:[#allocation2 + $0x30] sm:$0xff] %vm396_vm6, %v391_v3 }
 0x11a   : > { %v420_v4 = vld [vmem:[#allocation2 + $0x10] sm:$0xff] }
 0x11b   : > { %485 = vmatmul.f32.gmra.mxu1 %v420_v4 }
 0x120   : > { %v424_v6 = vld [vmem:[#allocation2 + $0x30] sm:$0xff] }
 0x123   : > { %488 = vmatmul.f32.gmra.mxu1 %v422_v5 }
 0x12b   : > { %491 = vmatmul.f32.gmra.mxu1 %v424_v6  ;;  %v602_v6 = vld [vmem:[%s1321_s4 + $0x30] sm:$0xff] }
 0x12c   : > { %645 = vmatpush.msra.mxu3 %v602_v6 }
 0x12e   : > { %v512_v15 = vpop.f32.mrf.mxu2  ;;  %646 = vmatpush.msra.mxu3 %v601_v36 }
 0x130   : > { %647 = vmatpush.msra.mxu3 %v600_v39 }
 0x132   : > { %648 = vmatpush.msra.mxu3 %v599_v10 }
 0x134   : > { %649 = vmatpush.msra.mxu3 %v598_v11 }
 0x136   : > { %v515_v22 = vpop.f32.mrf.mxu2  ;;  %650 = vmatpush.msra.mxu3 %v597_v12 }
 0x138   : > { %651 = vmatpush.msra.mxu3 %v596_v13 }
 0x13e   : > { %v518_v29 = vpop.f32.mrf.mxu2 }
 0x146   : > { %v521_v52 = vpop.f32.mrf.mxu2 }
 0x190   : > { %v483_v18 = vpop.f32.mrf.mxu1 }
 0x191   : > { %v484_v19 = vadd.f32 %v857_v17, %v483_v18 }
 0x193   : > { %v513_v20 = vadd.f32 %v512_v15, %v484_v19 }
 0x195   : > { %vm524_vm7 = vcmp.gt.f32.partialorder %v513_v20, 0.0  ;;  %v528_v21 = vmul.f32 0.01, %v513_v20 }
 0x197   : > { %v1178_v23 = vsel %vm524_vm7, %v513_v20, %v528_v21 }
 0x198   : > { %556 = vrot.lane.b32.xlu2 %v1178_v23, %s923_s29  ;;  %v486_v24 = vpop.f32.mrf.mxu1  ;;  %v536_v30 = vrot.slane %v1178_v23, 7  ;;  %v572_v31 = vrot.slane %v1178_v23, 1  ;;  %v858_v23 = vld [vmem:[%s1322_s5] ss:$0 sm:$0xff] }
 0x199   : > { %v487_v25 = vadd.f32 %v857_v17, %v486_v24 }
 0x19b   : > { %v516_v26 = vadd.f32 %v515_v22, %v487_v25 }
 0x19d   : > { %vm525_vm8 = vcmp.gt.f32.partialorder %v516_v26, 0.0  ;;  %v529_v27 = vmul.f32 0.01, %v516_v26 }
 0x19f   : > { %v533_v28 = vsel %vm525_vm8, %v516_v26, %v529_v27 }
 0x1a0   : > { %558 = vrot.lane.b32.xlu2 %v533_v28, %s923_s29  ;;  %v537_v32 = vrot.slane %v533_v28, 7  ;;  %v573_v33 = vrot.slane %v533_v28, 1  ;;  %v489_v34 = vpop.f32.mrf.mxu1 }
 0x1a1   : > { %v490_v35 = vadd.f32 %v857_v17, %v489_v34 }
 0x1a2   : > { %v578_v37 = vsel %vm405_vm2, %v572_v31, %v573_v33  ;;  %v542_v38 = vsel %vm366_vm3, %v536_v30, %v537_v32 }
 0x1a3   : > { %584 = vst.msk [vmem:[#allocation3 + $0x8] sm:$0xff] %vm375_vm1, %v578_v37  ;;  %v519_v40 = vadd.f32 %v518_v29, %v490_v35 }
 0x1a4   : > { %549 = vst.msk [vmem:[#allocation3 + $0x10] sm:$0xff] %vm375_vm1, %v542_v38 }
 0x1a5   : > { %vm526_vm9 = vcmp.gt.f32.partialorder %v519_v40, 0.0  ;;  %v530_v43 = vmul.f32 0.01, %v519_v40 }
 0x1a7   : > { %v534_v45 = vsel %vm526_vm9, %v519_v40, %v530_v43 }
 0x1a8   : > { %v492_v47 = vpop.f32.mrf.mxu1  ;;  %560 = vrot.lane.b32.xlu0 %v534_v45, %s923_s29  ;;  %v538_v48 = vrot.slane %v534_v45, 7  ;;  %v574_v49 = vrot.slane %v534_v45, 1 }
 0x1a9   : > { %v493_v50 = vadd.f32 %v857_v17, %v492_v47 }
 0x1aa   : > { %v577_v53 = vsel %vm405_vm2, %v573_v33, %v574_v49  ;;  %v589_v54 = vld [vmem:[#allocation3 + $0x8] sm:$0xff]  ;;  %v541_v55 = vsel %vm366_vm3, %v537_v32, %v538_v48 }
 0x1ab   : > { %v522_v56 = vadd.f32 %v521_v52, %v493_v50  ;;  %585 = vst.msk [vmem:[#allocation3 + $0x18] sm:$0xff] %vm375_vm1, %v577_v53  ;;  %803 = vmatmul.msk.f32.vlgmr.msrb.gmra.mxu0 %vm375_vm1, %v589_v54 }
 0x1ac   : > { %550 = vst.msk [vmem:[#allocation3 + $0x20] sm:$0xff] %vm375_vm1, %v541_v55 }
 0x1ad   : > { %vm527_vm10 = vcmp.gt.f32.partialorder %v522_v56, 0.0  ;;  %v531_v58 = vmul.f32 0.01, %v522_v56 }
 0x1af   : > { %v535_v60 = vsel %vm527_vm10, %v522_v56, %v531_v58 }
 0x1b0   : > { %562 = vrot.lane.b32.xlu1 %v535_v60, %s923_s29  ;;  %v539_v62 = vrot.slane %v535_v60, 7  ;;  %v575_v63 = vrot.slane %v535_v60, 1 }
 0x1b2   : > { %v576_v1 = vsel %vm405_vm2, %v574_v49, %v575_v63  ;;  %v579_v2 = vsel %vm405_vm2, %v575_v63, %v572_v31  ;;  %v591_v3 = vld [vmem:[#allocation3 + $0x18] sm:$0xff]  ;;  %v543_v4 = vsel %vm366_vm3, %v539_v62, %v536_v30  ;;  %v540_v8 = vsel %vm366_vm3, %v538_v48, %v539_v62 }
 0x1b3   : > { %v583_v5 = vsel %vm1078_vm4, %v579_v2, 0.0  ;;  %586 = vst.msk [vmem:[#allocation3 + $0x28] sm:$0xff] %vm375_vm1, %v576_v1  ;;  %804 = vmatmul.msk.f32.gmra.mxu0 %vm375_vm1, %v591_v3  ;;  %v544_v7 = vsel %vm1083_vm5, %v543_v4, 0.0 }
 0x1b4   : > { %587 = vst.msk [vmem:[#allocation3 + $0x38] sm:$0xff] %vm375_vm1, %v583_v5 }
 0x1b5   : > { %548 = vst.msk [vmem:[#allocation3] sm:$0xff] %vm375_vm1, %v544_v7 }
 0x1b6   : > { %551 = vst.msk [vmem:[#allocation3 + $0x30] sm:$0xff] %vm375_vm1, %v540_v8 }
 0x1ba   : > { %v593_v9 = vld [vmem:[#allocation3 + $0x28] sm:$0xff] }
 0x1bb   : > { %805 = vmatmul.msk.f32.gmra.mxu0 %vm375_vm1, %v593_v9  ;;  %v595_v16 = vld [vmem:[#allocation3 + $0x38] sm:$0xff] }
 0x1c3   : > { %806 = vmatmul.msk.f32.gmra.mxu0 %vm375_vm1, %v595_v16 }
 0x1f2   : > { %v557_v14 = vpop.permute.xlu2 %556 }
 0x1f3   : > { %568 = vst.msk [vmem:[#allocation3] sm:$0xff] %vm396_vm6, %v557_v14 }
 0x1fa   : > { %v559_v15 = vpop.permute.xlu2 %558  ;;  %v588_v17 = vld [vmem:[#allocation3] sm:$0xff] }
 0x1fb   : > { %569 = vst.msk [vmem:[#allocation3 + $0x10] sm:$0xff] %vm396_vm6, %v559_v15  ;;  %652 = vmatmul.f32.vlgmr.msra.gmra.mxu3 %v588_v17 }
 0x202   : > { %v590_v18 = vld [vmem:[#allocation3 + $0x10] sm:$0xff] }
 0x203   : > { %655 = vmatmul.f32.gmra.mxu3 %v590_v18 }
 0x21a   : > { %v561_v19 = vpop.permute.xlu0 %560 }
 0x21b   : > { %570 = vst.msk [vmem:[#allocation3 + $0x20] sm:$0xff] %vm396_vm6, %v561_v19 }
 0x222   : > { %v563_v20 = vpop.permute.xlu1 %562  ;;  %v592_v21 = vld [vmem:[#allocation3 + $0x20] sm:$0xff] }
 0x223   : > { %571 = vst.msk [vmem:[#allocation3 + $0x30] sm:$0xff] %vm396_vm6, %v563_v20  ;;  %658 = vmatmul.f32.gmra.mxu3 %v592_v21 }
 0x228   : > { %v682_v24 = vpop.f32.mrf.mxu0 }
 0x22a   : > { %v594_v22 = vld [vmem:[#allocation3 + $0x30] sm:$0xff] }
 0x22b   : > { %661 = vmatmul.f32.gmra.mxu3 %v594_v22 }
 0x230   : > { %v685_v32 = vpop.f32.mrf.mxu0 }
 0x238   : > { %v688_v37 = vpop.f32.mrf.mxu0 }
 0x240   : > { %v691_v46 = vpop.f32.mrf.mxu0 }
 0x27e   : > { %v653_v25 = vpop.f32.mrf.mxu3 }
 0x27f   : > { %v654_v26 = vadd.f32 %v858_v23, %v653_v25 }
 0x281   : > { %v683_v27 = vadd.f32 %v682_v24, %v654_v26 }
 0x283   : > { %vm694_vm11 = vcmp.gt.f32.partialorder %v683_v27, 0.0  ;;  %v698_v28 = vmul.f32 0.01, %v683_v27 }
 0x285   : > { %v702_v29 = vsel %vm694_vm11, %v683_v27, %v698_v28 }
 0x286   : > { %706 = vst [vmem:[%s1277_s9] sm:$0xff] %v702_v29  ;;  %v656_v30 = vpop.f32.mrf.mxu3 }
 0x287   : > { %v657_v31 = vadd.f32 %v858_v23, %v656_v30 }
 0x289   : > { %v686_v33 = vadd.f32 %v685_v32, %v657_v31 }
 0x28b   : > { %vm695_vm12 = vcmp.gt.f32.partialorder %v686_v33, 0.0  ;;  %v699_v34 = vmul.f32 0.01, %v686_v33 }
 0x28d   : > { %v703_v35 = vsel %vm695_vm12, %v686_v33, %v699_v34 }
 0x28e   : > { %707 = vst [vmem:[%s1277_s9 + $0x8] sm:$0xff] %v703_v35 }
 0x2a6   : > { %v659_v38 = vpop.f32.mrf.mxu3 }
 0x2a7   : > { %v660_v40 = vadd.f32 %v858_v23, %v659_v38 }
 0x2a9   : > { %v689_v41 = vadd.f32 %v688_v37, %v660_v40 }
 0x2ab   : > { %vm696_vm13 = vcmp.gt.f32.partialorder %v689_v41, 0.0  ;;  %v700_v42 = vmul.f32 0.01, %v689_v41 }
 0x2ad   : > { %v704_v43 = vsel %vm696_vm13, %v689_v41, %v700_v42 }
 0x2ae   : > { %708 = vst [vmem:[%s1277_s9 + $0x10] sm:$0xff] %v704_v43  ;;  %v662_v44 = vpop.f32.mrf.mxu3 }
 0x2af   : > { %v663_v45 = vadd.f32 %v858_v23, %v662_v44 }
 0x2b1   : > { %v692_v47 = vadd.f32 %v691_v46, %v663_v45 }
 0x2b3   : > { %vm697_vm14 = vcmp.gt.f32.partialorder %v692_v47, 0.0  ;;  %v701_v48 = vmul.f32 0.01, %v692_v47 }
 0x2b5   : > { %v705_v49 = vsel %vm697_vm14, %v692_v47, %v701_v48 }
 0x2b6   : > { %709 = vst [vmem:[%s1277_s9 + $0x18] sm:$0xff] %v705_v49 }
 0x2b7   : > { %886 = shalt.err (!%p883_p3)
}
 0x2b8   : > { %s924_s26 = smov 128   ;;  %s925_s9 = smov 8  }
 0x2b9   : > { %815 = dma.vmem_to_hbm [thread:$0]  (%p999_p5), %s724_s14, 512, %s726_s15, %s711_s25, %s924_s26, %s924_s26, %s925_s9  }
 0x2ba PF: > { %p821_p4 = scmp.ge.s32.totalorder %s921_s24, 2  ;;  %s740_s10 = sand.u32 1, %s909_s21  }
 0x2bb   : > { %s741_s11 = scalar_lea.sflag [#allocation5], %s740_s10 }
 0x2bc   : > { %p818_p7 = pnand %p821_p4, %p1003_p6 }
 0x2be   : > { %p819_p8 = pneg %p818_p7 }
 0x2c0   : > { %904 = dma.done.wait (%p819_p8), %s741_s11, 512  }
 0x2c1   : > { %906 = vsyncadd (%p819_p8), %s741_s11, 4294966784  ;;  %p16_p9 = scmp.ge.s32.totalorder %s986_s27, 4   ;;  %s1330_s21 = smov %s913_s22 }
 0x2c2   : > { %s1331_s22 = smov %s917_s23  ;;  %s1332_s23 = smov %s997_s30 }
 0x2c3   : > { %s1333_s24 = smov %s986_s27  ;;  %18 = sbr.rel (!%p16_p9) target bundleno = 3 (0x3), region = 79 }
 0x2c8   :  { %747 = vsyncpa [#allocation5], 1 }
 0x2c9   :  { %749 = vsyncpa [#allocation5 + $0x1], 1 }

</bundles_post_ra>
